<compile_context>
chip_gen: v5e
topology: v5e:2x2
jax: 0.10.0
libtpu: 0.0.40
codegen_flags: <defaults>
</compile_context>

<pallas_src>
import functools

import jax
import jax.numpy as jnp
from jax.experimental import pallas as pl
from jax.experimental.pallas import tpu as pltpu

IGNORE_INDEX = -100  # nn.CrossEntropyLoss default (255 was never forwarded)


def _ce_kernel(logits_ref, tgt_ref, psum_ref, pcnt_ref, *,
               th, acc_rows, h, w, num_classes, s_per, ignore_index):
    p = pl.program_id(0)
    s = pl.program_id(2)

    @pl.when(s == 0)
    def _():
        psum_ref[...] = jnp.zeros_like(psum_ref)
        pcnt_ref[...] = jnp.zeros_like(pcnt_ref)

    x = logits_ref[0]                                  # (C, th, W) native dtype
    t = tgt_ref[0]                                     # (th, W) int32

    # Numerically stable log-softmax cross-entropy.  Max over classes is exact
    # in the native dtype (no rounding in max); the cast to f32 fuses into the
    # subtract, so bf16 inputs skip a separate full-tile cast pass.
    mx = jnp.max(x, axis=0, keepdims=True)             # (1, th, W)
    pz = x.astype(jnp.float32) - mx.astype(jnp.float32)  # (C, th, W) f32
    sumexp = jnp.sum(jnp.exp(pz), axis=0)              # (th, W) f32
    cls = jax.lax.broadcasted_iota(jnp.int32, (num_classes, 1, 1), 0)
    tgt_p = jnp.sum(jnp.where(cls == t[None], pz, 0.0), axis=0)  # (th, W)
    loss = jnp.log(sumexp) - tgt_p                     # (th, W)

    # Mask ignored labels, rows past H (padded tail of the last row block) and
    # fully-duplicated blocks from the megacore row split (unclamped block
    # index >= total blocks => every row index >= H).  where-select, so
    # garbage Inf/NaN lanes cannot leak.
    blk = p * s_per + s
    rows = blk * th + jax.lax.broadcasted_iota(jnp.int32, (th, w), 0)
    valid = (t != ignore_index) & (rows < h)
    loss_m = jnp.where(valid, loss, 0.0)
    cnt = jnp.where(valid, 1.0, 0.0)

    def fold(v):
        # Tree fold rows -> acc_rows.  All slice offsets are multiples of 8
        # (guaranteed by _fold_rows_target), log-depth dependent-add chain,
        # ~one pass of VPU adds total.
        r = v.shape[0]
        while r > acc_rows:
            half = r // 2
            v = v[:half, :] + v[half:, :]
            r = half
        return v

    psum_ref[...] = psum_ref[...] + fold(loss_m)[None, None, :, :]
    pcnt_ref[...] = pcnt_ref[...] + fold(cnt)[None, None, :, :]


def _fold_rows_target(rows):
    """Rows remaining after the in-kernel tree fold (8-aligned halvings)."""
    r = rows
    while r > 8 and r % 2 == 0 and (r // 2) % 8 == 0:
        r //= 2
    return r


def _pick_th(h, w, c, esize, tile_bytes):
    """Row-block height: 8*2^k rows sized so the logits tile ~= tile_bytes,
    or the full H extent when the whole image fits in one tile."""
    bytes_per_row = max(1, c * w * esize)
    max_rows = max(1, tile_bytes // bytes_per_row)
    if max_rows >= h:
        return h
    th = 8
    while th * 2 <= max_rows:
        th *= 2
    return th if th < h else h


def _vmem_capacity_bytes():
    try:
        return int(getattr(pltpu.get_tpu_info(), "vmem_capacity_bytes", 0))
    except Exception:
        return 0


def ce_loss(pred_nchw, target_nhw, *, tile_bytes=None, vmem_limit_bytes=None):
    """pred_nchw: (N, C, H, W) float logits; target_nhw: (N, H, W) int labels."""
    N, C, H, W = pred_nchw.shape
    esize = jnp.dtype(pred_nchw.dtype).itemsize

    # Generation-gated budgets: big tiles on 128 MiB-VMEM chips (v5e/v6e),
    # smaller tiles + lower scoped limit on v7x (64 MiB per TensorCore).
    if tile_bytes is None or vmem_limit_bytes is None:
        cap = _vmem_capacity_bytes()
        if cap > 96 * 1024 * 1024:            # v5e / v6e class
            auto_tile, auto_limit = 6 * 1024 * 1024, 80 * 1024 * 1024
        else:                                  # v7x class / unknown (safe)
            auto_tile, auto_limit = 2 * 1024 * 1024, 48 * 1024 * 1024
        tile_bytes = tile_bytes if tile_bytes is not None else auto_tile
        vmem_limit_bytes = (vmem_limit_bytes if vmem_limit_bytes is not None
                            else auto_limit)

    th = _pick_th(H, W, C, esize, tile_bytes)
    acc_rows = _fold_rows_target(th)
    S_total = pl.cdiv(H, th)
    # When N == 1, split the row axis across two 'parallel' slabs so v7x's
    # second TensorCore is used; harmless (pure loop) on 1-TC generations.
    P = 2 if (N == 1 and S_total >= 2) else 1
    S_per = pl.cdiv(S_total, P)

    targets = target_nhw.astype(jnp.int32)

    kernel = functools.partial(
        _ce_kernel, th=th, acc_rows=acc_rows, h=H, w=W, num_classes=C,
        s_per=S_per, ignore_index=IGNORE_INDEX)

    elems = N * C * H * W
    cost = pl.CostEstimate(
        flops=6 * elems,
        transcendentals=elems + N * H * W,
        bytes_accessed=elems * esize + N * H * W * 4)

    logits_map = lambda p, n, s: (n, 0, jnp.minimum(p * S_per + s, S_total - 1), 0)
    target_map = lambda p, n, s: (n, jnp.minimum(p * S_per + s, S_total - 1), 0)
    acc_map = lambda p, n, s: (p, n, 0, 0)

    psum, pcnt = pl.pallas_call(
        kernel,
        out_shape=(jax.ShapeDtypeStruct((P, N, acc_rows, W), jnp.float32),
                   jax.ShapeDtypeStruct((P, N, acc_rows, W), jnp.float32)),
        grid_spec=pltpu.PrefetchScalarGridSpec(
            num_scalar_prefetch=0,
            grid=(P, N, S_per),
            in_specs=[
                pl.BlockSpec((1, C, th, W), logits_map),
                pl.BlockSpec((1, th, W), target_map),
            ],
            out_specs=[
                pl.BlockSpec((1, 1, acc_rows, W), acc_map),
                pl.BlockSpec((1, 1, acc_rows, W), acc_map),
            ],
        ),
        compiler_params=pltpu.CompilerParams(
            dimension_semantics=("parallel", "parallel", "arbitrary"),
            vmem_limit_bytes=vmem_limit_bytes),
        cost_estimate=cost,
    )(pred_nchw, targets)

    # reduction='mean' over non-ignored elements (tiny final reduce in XLA).
    # NaN when every element is ignored, matching PyTorch.
    return jnp.sum(psum) / jnp.sum(pcnt)


def _ce_loss_ref(pred_nchw, target_nhw):
    """Pure-JAX reference matching nn.CrossEntropyLoss(reduction='mean')."""
    N, C, H, W = pred_nchw.shape
    logits = jnp.transpose(pred_nchw, (0, 2, 3, 1)).reshape(-1, C).astype(jnp.float32)
    t = target_nhw.reshape(-1).astype(jnp.int32)
    lse = jax.nn.logsumexp(logits, axis=-1)
    tgt = jnp.take_along_axis(logits, jnp.clip(t, 0, C - 1)[:, None], axis=-1)[:, 0]
    loss = lse - tgt
    valid = (t != IGNORE_INDEX)
    return jnp.sum(jnp.where(valid, loss, 0.0)) / jnp.sum(valid)


if __name__ == "__main__":
    key = jax.random.PRNGKey(0)
    k1, k2, k3, k4, k5, k6, k7, k8 = jax.random.split(key, 8)

    # Case 1: module-spec shapes (N=2, C=4, 16x16), no ignored pixels.
    N, C, H, W = 2, 4, 16, 16
    pred = jax.random.normal(k1, (N, C, H, W), dtype=jnp.float32)
    target = jax.random.randint(k2, (N, H, W), 0, C, dtype=jnp.int32)
    loss = ce_loss(pred, target)
    jax.block_until_ready(loss)
    ref = _ce_loss_ref(pred, target)
    assert jnp.allclose(loss, ref, rtol=1e-5, atol=1e-5), (loss, ref)

    # Case 2: ragged spatial extent (W not a multiple of 128, small H) plus
    # ignored (-100) targets: exercises lane padding and the ignore mask.
    N2, C2, H2, W2 = 2, 3, 10, 13
    pred2 = jax.random.normal(k3, (N2, C2, H2, W2), dtype=jnp.float32)
    tgt2 = jax.random.randint(k4, (N2, H2, W2), 0, C2, dtype=jnp.int32)
    drop = jax.random.bernoulli(k5, 0.3, (N2, H2, W2))
    tgt2 = jnp.where(drop, jnp.int32(IGNORE_INDEX), tgt2)
    loss2 = ce_loss(pred2, tgt2)
    jax.block_until_ready(loss2)
    ref2 = _ce_loss_ref(pred2, tgt2)
    assert jnp.allclose(loss2, ref2, rtol=1e-5, atol=1e-5), (loss2, ref2)

    # Case 3: N=1 with a forced-small tile to exercise the tiled-row path,
    # the ragged last row block, the clamped duplicate block of the row
    # split (P=2), the tree fold, and the ignore mask together.
    N3, C3, H3, W3 = 1, 5, 40, 40
    pred3 = jax.random.normal(k6, (N3, C3, H3, W3), dtype=jnp.float32)
    tgt3 = jax.random.randint(k7, (N3, H3, W3), 0, C3, dtype=jnp.int32)
    drop3 = jax.random.bernoulli(k8, 0.3, (N3, H3, W3))
    tgt3 = jnp.where(drop3, jnp.int32(IGNORE_INDEX), tgt3)
    loss3 = ce_loss(pred3, tgt3, tile_bytes=16 * 1024)
    jax.block_until_ready(loss3)
    ref3 = _ce_loss_ref(pred3, tgt3)
    assert jnp.allclose(loss3, ref3, rtol=1e-5, atol=1e-5), (loss3, ref3)

    print("KERNEL_OK")
</pallas_src>

<mosaic_0001>
module attributes {stable_mosaic.version = 11 : i64} {
  func.func @_ce_kernel(%arg0: i32, %arg1: i32, %arg2: i32, %arg3: memref<1x4x16x16xf32, #tpu.memory_space<vmem>>, %arg4: memref<1x16x16xi32, #tpu.memory_space<vmem>>, %arg5: memref<1x1x8x16xf32, #tpu.memory_space<vmem>>, %arg6: memref<1x1x8x16xf32, #tpu.memory_space<vmem>>) attributes {dimension_semantics = [#tpu.dimension_semantics<parallel>, #tpu.dimension_semantics<parallel>, #tpu.dimension_semantics<arbitrary>], iteration_bounds = array<i64: 1, 2, 1>, scalar_prefetch = 0 : i64, scratch_operands = 0 : i64, tpu.core_type = #tpu.core_type<tc>, window_params = [{transform_indices = @transform_0, window_bounds = array<i64: 1, 4, 16, 16>}, {transform_indices = @transform_1, window_bounds = array<i64: 1, 16, 16>}, {transform_indices = @transform_2, window_bounds = array<i64: 1, 1, 8, 16>}, {transform_indices = @transform_3, window_bounds = array<i64: 1, 1, 8, 16>}]} {
    %c0_i32 = arith.constant 0 : i32
    %0 = arith.cmpi eq, %arg2, %c0_i32 : i32
    %1 = arith.extui %0 : i1 to i32
    %c0_i32_0 = arith.constant 0 : i32
    %2 = arith.cmpi ne, %1, %c0_i32_0 : i32
    scf.if %2 {
      %cst_30 = arith.constant 0.000000e+00 : f32
      %53 = vector.broadcast %cst_30 : f32 to vector<1x1x8x16xf32>
      %c0_31 = arith.constant 0 : index
      %c0_32 = arith.constant 0 : index
      %c0_33 = arith.constant 0 : index
      %c0_34 = arith.constant 0 : index
      %54 = vector.load %arg5[%c0_31, %c0_32, %c0_33, %c0_34] : memref<1x1x8x16xf32, #tpu.memory_space<vmem>>, vector<1x1x8x16xf32>
      tpu.vector_store %arg5[%c0_31, %c0_32, %c0_33, %c0_34], %53 {strides = array<i32>} : memref<1x1x8x16xf32, #tpu.memory_space<vmem>>, vector<1x1x8x16xf32>,
      %cst_35 = arith.constant 0.000000e+00 : f32
      %55 = vector.broadcast %cst_35 : f32 to vector<1x1x8x16xf32>
      %c0_36 = arith.constant 0 : index
      %c0_37 = arith.constant 0 : index
      %c0_38 = arith.constant 0 : index
      %c0_39 = arith.constant 0 : index
      %56 = vector.load %arg6[%c0_36, %c0_37, %c0_38, %c0_39] : memref<1x1x8x16xf32, #tpu.memory_space<vmem>>, vector<1x1x8x16xf32>
      tpu.vector_store %arg6[%c0_36, %c0_37, %c0_38, %c0_39], %55 {strides = array<i32>} : memref<1x1x8x16xf32, #tpu.memory_space<vmem>>, vector<1x1x8x16xf32>,
    } else {
    }
    %c0 = arith.constant 0 : index
    %c0_1 = arith.constant 0 : index
    %c0_2 = arith.constant 0 : index
    %c0_3 = arith.constant 0 : index
    %3 = vector.load %arg3[%c0, %c0_1, %c0_2, %c0_3] : memref<1x4x16x16xf32, #tpu.memory_space<vmem>>, vector<1x4x16x16xf32>
    %4 = vector.shape_cast %3 : vector<1x4x16x16xf32> to vector<4x16x16xf32>
    %c0_4 = arith.constant 0 : index
    %c0_5 = arith.constant 0 : index
    %c0_6 = arith.constant 0 : index
    %5 = vector.load %arg4[%c0_4, %c0_5, %c0_6] : memref<1x16x16xi32, #tpu.memory_space<vmem>>, vector<1x16x16xi32>
    %6 = vector.shape_cast %5 : vector<1x16x16xi32> to vector<16x16xi32>
    %cst = arith.constant dense<0xFF800000> : vector<16x16xf32>
    %7 = vector.multi_reduction <maximumf>, %4, %cst [0] : vector<4x16x16xf32> to vector<16x16xf32>
    %8 = vector.shape_cast %7 : vector<16x16xf32> to vector<1x16x16xf32>
    %9 = vector.broadcast %8 : vector<1x16x16xf32> to vector<4x16x16xf32>
    %10 = arith.subf %4, %9 : vector<4x16x16xf32>
    %11 = math.exp %10 : vector<4x16x16xf32>
    %cst_7 = arith.constant dense<0.000000e+00> : vector<16x16xf32>
    %12 = vector.multi_reduction <add>, %11, %cst_7 [0] : vector<4x16x16xf32> to vector<16x16xf32>
    %13 = tpu.iota {dimensions = array<i32: 0>} : vector<4x1x1xi32>
    %14 = vector.shape_cast %6 : vector<16x16xi32> to vector<1x16x16xi32>
    %15 = vector.broadcast %13 : vector<4x1x1xi32> to vector<4x16x16xi32>
    %16 = vector.broadcast %14 : vector<1x16x16xi32> to vector<4x16x16xi32>
    %17 = arith.cmpi eq, %15, %16 : vector<4x16x16xi32>
    %cst_8 = arith.constant 0.000000e+00 : f32
    %18 = vector.broadcast %cst_8 : f32 to vector<4x16x16xf32>
    %19 = arith.select %17, %10, %18 : vector<4x16x16xi1>, vector<4x16x16xf32>
    %cst_9 = arith.constant dense<0.000000e+00> : vector<16x16xf32>
    %20 = vector.multi_reduction <add>, %19, %cst_9 [0] : vector<4x16x16xf32> to vector<16x16xf32>
    %21 = math.log %12 : vector<16x16xf32>
    %22 = arith.subf %21, %20 : vector<16x16xf32>
    %c1_i32 = arith.constant 1 : i32
    %23 = arith.muli %arg0, %c1_i32 : i32
    %24 = arith.addi %23, %arg2 : i32
    %c16_i32 = arith.constant 16 : i32
    %25 = arith.muli %24, %c16_i32 : i32
    %26 = tpu.iota {dimensions = array<i32: 0>} : vector<16x16xi32>
    %27 = vector.broadcast %25 : i32 to vector<16x16xi32>
    %28 = arith.addi %27, %26 : vector<16x16xi32>
    %c-100_i32 = arith.constant -100 : i32
    %29 = vector.broadcast %c-100_i32 : i32 to vector<16x16xi32>
    %30 = arith.cmpi ne, %6, %29 : vector<16x16xi32>
    %c16_i32_10 = arith.constant 16 : i32
    %31 = vector.broadcast %c16_i32_10 : i32 to vector<16x16xi32>
    %32 = arith.cmpi slt, %28, %31 : vector<16x16xi32>
    %33 = arith.andi %30, %32 : vector<16x16xi1>
    %cst_11 = arith.constant 0.000000e+00 : f32
    %34 = vector.broadcast %cst_11 : f32 to vector<16x16xf32>
    %35 = arith.select %33, %22, %34 : vector<16x16xi1>, vector<16x16xf32>
    %cst_12 = arith.constant 1.000000e+00 : f32
    %cst_13 = arith.constant 0.000000e+00 : f32
    %36 = vector.broadcast %cst_12 : f32 to vector<16x16xf32>
    %37 = vector.broadcast %cst_13 : f32 to vector<16x16xf32>
    %38 = arith.select %33, %36, %37 : vector<16x16xi1>, vector<16x16xf32>
    %c0_14 = arith.constant 0 : index
    %c0_15 = arith.constant 0 : index
    %c0_16 = arith.constant 0 : index
    %c0_17 = arith.constant 0 : index
    %39 = vector.load %arg5[%c0_14, %c0_15, %c0_16, %c0_17] : memref<1x1x8x16xf32, #tpu.memory_space<vmem>>, vector<1x1x8x16xf32>
    %40 = vector.extract_strided_slice %35 {offsets = [0, 0], sizes = [8, 16], strides = [1, 1]} : vector<16x16xf32> to vector<8x16xf32>
    %41 = vector.extract_strided_slice %35 {offsets = [8, 0], sizes = [8, 16], strides = [1, 1]} : vector<16x16xf32> to vector<8x16xf32>
    %42 = arith.addf %40, %41 : vector<8x16xf32>
    %43 = vector.shape_cast %42 : vector<8x16xf32> to vector<1x1x8x16xf32>
    %44 = arith.addf %39, %43 : vector<1x1x8x16xf32>
    %c0_18 = arith.constant 0 : index
    %c0_19 = arith.constant 0 : index
    %c0_20 = arith.constant 0 : index
    %c0_21 = arith.constant 0 : index
    %45 = vector.load %arg5[%c0_18, %c0_19, %c0_20, %c0_21] : memref<1x1x8x16xf32, #tpu.memory_space<vmem>>, vector<1x1x8x16xf32>
    tpu.vector_store %arg5[%c0_18, %c0_19, %c0_20, %c0_21], %44 {strides = array<i32>} : memref<1x1x8x16xf32, #tpu.memory_space<vmem>>, vector<1x1x8x16xf32>,
    %c0_22 = arith.constant 0 : index
    %c0_23 = arith.constant 0 : index
    %c0_24 = arith.constant 0 : index
    %c0_25 = arith.constant 0 : index
    %46 = vector.load %arg6[%c0_22, %c0_23, %c0_24, %c0_25] : memref<1x1x8x16xf32, #tpu.memory_space<vmem>>, vector<1x1x8x16xf32>
    %47 = vector.extract_strided_slice %38 {offsets = [0, 0], sizes = [8, 16], strides = [1, 1]} : vector<16x16xf32> to vector<8x16xf32>
    %48 = vector.extract_strided_slice %38 {offsets = [8, 0], sizes = [8, 16], strides = [1, 1]} : vector<16x16xf32> to vector<8x16xf32>
    %49 = arith.addf %47, %48 : vector<8x16xf32>
    %50 = vector.shape_cast %49 : vector<8x16xf32> to vector<1x1x8x16xf32>
    %51 = arith.addf %46, %50 : vector<1x1x8x16xf32>
    %c0_26 = arith.constant 0 : index
    %c0_27 = arith.constant 0 : index
    %c0_28 = arith.constant 0 : index
    %c0_29 = arith.constant 0 : index
    %52 = vector.load %arg6[%c0_26, %c0_27, %c0_28, %c0_29] : memref<1x1x8x16xf32, #tpu.memory_space<vmem>>, vector<1x1x8x16xf32>
    tpu.vector_store %arg6[%c0_26, %c0_27, %c0_28, %c0_29], %51 {strides = array<i32>} : memref<1x1x8x16xf32, #tpu.memory_space<vmem>>, vector<1x1x8x16xf32>,
    return
  }
  func.func @transform_0(%arg0: i32, %arg1: i32, %arg2: i32) -> (i32, i32, i32, i32) {
    %c1_i32 = arith.constant 1 : i32
    %0 = arith.muli %arg0, %c1_i32 : i32
    %1 = arith.addi %0, %arg2 : i32
    %c0_i32 = arith.constant 0 : i32
    %2 = arith.minsi %1, %c0_i32 : i32
    %c0_i32_0 = arith.constant 0 : i32
    %c0_i32_1 = arith.constant 0 : i32
    %c0_i32_2 = arith.constant 0 : i32
    return %arg1, %c0_i32_0, %2, %c0_i32_1 : i32, i32, i32, i32
  }
  func.func @transform_1(%arg0: i32, %arg1: i32, %arg2: i32) -> (i32, i32, i32) {
    %c1_i32 = arith.constant 1 : i32
    %0 = arith.muli %arg0, %c1_i32 : i32
    %1 = arith.addi %0, %arg2 : i32
    %c0_i32 = arith.constant 0 : i32
    %2 = arith.minsi %1, %c0_i32 : i32
    %c0_i32_0 = arith.constant 0 : i32
    %c0_i32_1 = arith.constant 0 : i32
    return %arg1, %2, %c0_i32_0 : i32, i32, i32
  }
  func.func @transform_2(%arg0: i32, %arg1: i32, %arg2: i32) -> (i32, i32, i32, i32) {
    %c0_i32 = arith.constant 0 : i32
    %c0_i32_0 = arith.constant 0 : i32
    %c0_i32_1 = arith.constant 0 : i32
    return %arg0, %arg1, %c0_i32, %c0_i32_0 : i32, i32, i32, i32
  }
  func.func @transform_3(%arg0: i32, %arg1: i32, %arg2: i32) -> (i32, i32, i32, i32) {
    %c0_i32 = arith.constant 0 : i32
    %c0_i32_0 = arith.constant 0 : i32
    %c0_i32_1 = arith.constant 0 : i32
    return %arg0, %arg1, %c0_i32, %c0_i32_0 : i32, i32, i32, i32
  }
}

</mosaic_0001>

<bundles_post_ra>
// kernel: tpu_custom_call.1
= control target key start
LH: loop header
LB: loop body
LE: loop exit
PB: predicated region body
PF: predicated region fallthrough
CT: control target
= control target key end

     0   :  { %s1207_s0 = inlined_call_operand.hbm [shape: f32[2,4,16,16], index: 0, kind: input, shape index: {}]   ;;  %s1208_s1 = inlined_call_operand.hbm [shape: s32[2,16,16], index: 1, kind: input, shape index: {}]   ;;  %s1209_s2 = inlined_call_operand.hbm [shape: f32[1,2,8,16], index: 2, kind: output, shape index: {0}]   ;;  %s1210_s3 = inlined_call_operand.hbm [shape: f32[1,2,8,16], index: 3, kind: output, shape index: {1}]  }
   0x1   :  { %1211 = sst [smem:[#allocation14_spill]] %s1207_s0 }
   0x2   :  { %9 = vsyncpa [#allocation3], 0 }
   0x3   :  { %11 = vsyncpa [#allocation3 + $0x1], 0 }
   0x4   :  { %12 = vsyncpa [#allocation6], 0 }
   0x5   :  { %14 = vsyncpa [#allocation6 + $0x1], 0 }
   0x6   :  { %15 = vsyncpa [#allocation4], 0 }
   0x7   :  { %17 = vsyncpa [#allocation4 + $0x1], 0 }
   0x8   :  { %18 = vsyncpa [#allocation9], 0 }
   0x9   :  { %20 = vsyncpa [#allocation9 + $0x1], 0  ;;  %s940_s12 = smov 0   ;;  %s942_s13 = smov 0  }
   0xa   :  { %s944_s14 = smov 0   ;;  %s946_s15 = smov 0  }
   0xb   :  { %s948_s16 = smov 0   ;;  %s950_s17 = smov 0  }
   0xc LB: > { %s619_s18 = sadd.s32 4294967295, %s915_s17   ;;  %s620_s19 = sadd.s32 4294967294, %s915_s17   ;;  %s915_s17 = sphi %s950_s17, %s26_s17   ;;  %s911_s16 = sphi %s948_s16, %s1222_s16   ;;  %s907_s15 = sphi %s946_s15, %s1221_s15   ;;  %s903_s14 = sphi %s944_s14, %s1220_s14   ;;  %s899_s13 = sphi %s942_s13, %s1219_s13   ;;  %s895_s12 = sphi %s940_s12, %s1218_s12  }
   0xd   : > { %s41_s20 = sadd.s32 1, %s911_s16  ;;  %s60_s21 = sadd.s32 1, %s903_s14 }
   0xe   : > { %p43_p0 = scmp.ge.s32.totalorder %s41_s20, 2  ;;  %p67_p1 = scmp.ne.s32.totalorder %s903_s14, %s899_s13 }
   0xf   : > { %p68_p2 = scmp.eq.s32.totalorder %s915_s17, 0  ;;  %p73_p3 = scmp.ne.s32.totalorder %s899_s13, %s895_s12 }
  0x10   : > { %s1224_s20 = smov (%p43_p0, %s41_s20), 0  ;;  %p74_p5 = scmp.eq.s32.totalorder %s619_s18, 0 }
  0x11   : > { %p981_p4 = por %p68_p2, %p67_p1  ;;  %s55_s23 = ssub.s32 %s911_s16, %s1224_s20 }
  0x12   : > { %p133_p6 = scmp.eq.s32.totalorder %s619_s18, 1  ;;  %p58_p7 = scmp.eq.s32.totalorder %s55_s23, 0 }
  0x13   : > { %p987_p8 = por %p74_p5, %p73_p3  ;;  %p139_p10 = scmp.eq.s32.totalorder %s620_s19, 1 }
  0x14   : > { %p991_p9 = por %p133_p6, %p67_p1  ;;  %p622_p12 = scmp.ge.s32.totalorder %s915_s17, 2 }
  0x15   : > { %s996_s26 = scalar_select %p58_p7, %s903_s14, %s60_s21  }
  0x16   : > { %p998_p11 = por %p139_p10, %p73_p3  ;;  %p664_p13 = scmp.lt.s32.totalorder %s915_s17, 2 }
  0x17   : > { %s1005_s28 = sand.u32 1, %s903_s14   ;;  %s640_s30 = sshll.u32 %s911_s16, 6 }
  0x18   : > { %s623_s29 = sshll.u32 %s1005_s28, 6  ;;  %s1216_s0 = sld [smem:[#allocation14_spill]] }
  0x19   : > { %s191_s7 = scalar_lea.vmem [#allocation2], %s623_s29  ;;  %p1014_p0 = pnand %p664_p13, %p981_p4 }
  0x1a   : > { %s204_s8 = sshll.u32 %s191_s7, 4  ;;  %p629_p1 = scmp.ge.s32.totalorder %s915_s17, 1  ;;  %s205_s8 = int_to_ptr.vmem [resolvable:$true] %s204_s8 }
  0x1b   : > { %s188_s11 = scalar_lea.sflag [#allocation3], %s1005_s28  ;;  %s917_s18 = smov 128  }
  0x1c   : > { %s918_s19 = smov 8   ;;  %p239_p2 = scmp.lt.s32.totalorder %s915_s17, 3 }
  0x1d   : > { %s626_s21 = sshll.u32 %s1005_s28, 4  ;;  %s641_s23 = sshll.u32 %s911_s16, 4 }
  0x1e   : > { %s201_s6 = scalar_lea.hbm %s1216_s0, %s640_s30  ;;  %p240_p3 = pnand %p629_p1, %p239_p2 }
  0x1f   : > { %s202_s9 = sshll.u32 %s201_s6, 4  ;;  %s228_s22 = scalar_lea.hbm %s1208_s1, %s641_s23  ;;  %s203_s9 = int_to_ptr.hbm [resolvable:$true] %s202_s9 }
  0x20   : > { %653 = dma.hbm_to_vmem [thread:$0]  (!%p1014_p0), %s203_s9, 1024, %s205_s8, %s188_s11, %s917_s18, %s917_s18, %s918_s19  }
  0x21   : > { %s218_s4 = scalar_lea.vmem [#allocation5], %s626_s21  ;;  %s229_s6 = sshll.u32 %s228_s22, 4  ;;  %s230_s6 = int_to_ptr.hbm [resolvable:$true] %s229_s6 }
  0x22   : > { %s231_s5 = sshll.u32 %s218_s4, 4  ;;  %s215_s7 = scalar_lea.sflag [#allocation6], %s1005_s28  ;;  %s232_s5 = int_to_ptr.vmem [resolvable:$true] %s231_s5 }
  0x23   : > { %656 = dma.hbm_to_vmem [thread:$0]  (!%p1014_p0), %s230_s6, 256, %s232_s5, %s215_s7, %s917_s18, %s917_s18, %s918_s19  }
  0x24   : > { %243 = sbr.rel (%p240_p3) target bundleno = 94 (0x5e), region = 28  ;;  %s1032_s8 = sand.u32 (!%p240_p3), 1, %s899_s13  }
  0x25   : > { %s630_s9 = sshll.u32 (!%p240_p3), %s1032_s8, 6  ;;  %s246_s11 = scalar_lea.sflag (!%p240_p3), [#allocation3], %s1032_s8 }
  0x26   : > { %s249_s0 = scalar_lea.vmem (!%p240_p3), [#allocation2], %s630_s9 }
  0x29   : > { %878 = dma.done.wait (%p987_p8), %s246_s11, 1024  }
  0x2a   : > { %880 = vsyncadd (%p987_p8), %s246_s11, 4294966272  ;;  %s631_s28 = sshll.u32 %s1032_s8, 4  ;;  %s256_s10 = scalar_lea.sflag [#allocation6], %s1032_s8 }
  0x2b   : > { %s1042_s18 = scalar_lea.vmem [#allocation5], %s631_s28 }
  0x2c   : > { %882 = dma.done.wait (%p987_p8), %s256_s10, 256  }
  0x2d   : > { %884 = vsyncadd (%p987_p8), %s256_s10, 4294967040  ;;  %s632_s19 = sshll.u32 %s1032_s8, 3  ;;  %vm305_vm0 = vcmask 130048   ;;  %v919_v0 = vmov 0.0   ;;  %v308_v1 = vld [vmem:[%s249_s0] sm:$0xff]  ;;  %v309_v2 = vld [vmem:[%s249_s0 + $0x8] sm:$0xff] }
  0x2e   : > { %s1049_s21 = scalar_lea.vmem [#allocation7], %s632_s19  ;;  %s1054_s23 = scalar_lea.vmem [#allocation8], %s632_s19  ;;  %v310_v3 = vld [vmem:[%s249_s0 + $0x10] sm:$0xff]  ;;  %v311_v4 = vld [vmem:[%s249_s0 + $0x18] sm:$0xff]  ;;  %v312_v5 = vld [vmem:[%s249_s0 + $0x20] sm:$0xff]  ;;  %v319_v7 = vsel %vm305_vm0, %v308_v1, -inf }
  0x2f   : > { %306 = vst.msk [vmem:[%s1049_s21] sm:$0xff] %vm305_vm0, %v919_v0  ;;  %v313_v6 = vld [vmem:[%s249_s0 + $0x28] sm:$0xff]  ;;  %v320_v8 = vsel %vm305_vm0, %v310_v3, -inf  ;;  %v326_v9 = vsel %vm305_vm0, %v309_v2, -inf  ;;  %v314_v10 = vld [vmem:[%s249_s0 + $0x30] sm:$0xff]  ;;  %v315_v11 = vld [vmem:[%s249_s0 + $0x38] sm:$0xff] }
  0x30   : > { %307 = vst.msk [vmem:[%s1054_s23] sm:$0xff] %vm305_vm0, %v919_v0  ;;  %v321_v12 = vsel %vm305_vm0, %v312_v5, -inf  ;;  %v327_v13 = vsel %vm305_vm0, %v311_v4, -inf  ;;  %v328_v14 = vsel %vm305_vm0, %v313_v6, -inf  ;;  %v323_v16 = vsel %vm305_vm0, %v314_v10, -inf  ;;  %v1074_v35 = vld [vmem:[%s1042_s18] sm:$0xff] }
  0x31   : > { %v322_v15 = vmax.f32 %v319_v7, %v321_v12  ;;  %v329_v17 = vmax.f32 %v326_v9, %v328_v14  ;;  %v330_v18 = vsel %vm305_vm0, %v315_v11, -inf  ;;  %v324_v19 = vmax.f32 %v320_v8, %v323_v16  ;;  %s636_s0 = sshll.u32 %s907_s15, 3  ;;  %v1079_v38 = vld [vmem:[%s1042_s18 + $0x8] sm:$0xff]  ;;  %s469_s22 = sshll.u32 %s1054_s23, 4  ;;  %s1119_s22 = int_to_ptr.vmem [resolvable:$true] %s469_s22 }
  0x32   : > { %v331_v20 = vmax.f32 %v327_v13, %v330_v18  ;;  %vm371_vm1 = vcmp.eq.s32.totalorder %v1074_v35, 0  ;;  %vm373_vm2 = vcmp.eq.s32.totalorder %v1074_v35, 1  ;;  %vm415_vm3 = vcmp.ne.s32.totalorder %v1074_v35, 4294967196  ;;  %s1092_s30 = scalar_lea.hbm %s1210_s3, %s636_s0  ;;  %s439_s5 = scalar_lea.sflag [#allocation9], %s1032_s8 }
  0x33   : > { %v325_v21 = vmax.f32 %v322_v15, %v324_v19  ;;  %vm416_vm4 = vcmp.ne.s32.totalorder %v1079_v38, 4294967196  ;;  %vm372_vm5 = vcmp.eq.s32.totalorder %v1079_v38, 0  ;;  %vm374_vm6 = vcmp.eq.s32.totalorder %v1079_v38, 1  ;;  %s471_s4 = sshll.u32 %s1092_s30, 4  ;;  %s817_s28 = scalar_lea.hbm %s1210_s3, 16  ;;  %s1121_s4 = int_to_ptr.hbm [resolvable:$true] %s471_s4 }
  0x34   : > { %v332_v22 = vmax.f32 %v329_v17, %v331_v20  ;;  %vm375_vm7 = vcmp.eq.s32.totalorder %v1074_v35, 2  ;;  %v423_v46 = vsel %vm415_vm3, 1.0, %v919_v0  ;;  %v424_v47 = vsel %vm416_vm4, 1.0, %v919_v0  ;;  %s811_s6 = sshra.s32 %s1121_s4, 4  ;;  %s812_s6 = int_to_ptr.hbm [resolvable:$true] %s811_s6 }
  0x35   : > { %v333_v23 = vsub.f32 %v308_v1, %v325_v21  ;;  %v335_v25 = vsub.f32 %v310_v3, %v325_v21  ;;  %v337_v27 = vsub.f32 %v312_v5, %v325_v21  ;;  %v1069_v29 = vsub.f32 %v314_v10, %v325_v21  ;;  %s813_s7 = scalar_lea.hbm %s812_s6, 8  ;;  %p818_p7 = scmp.lt.s32.totalorder %s812_s6, %s1210_s3 }
  0x36   : > { %v334_v24 = vsub.f32 %v309_v2, %v332_v22  ;;  %v336_v26 = vsub.f32 %v311_v4, %v332_v22  ;;  %v1067_v28 = vsub.f32 %v313_v6, %v332_v22  ;;  %v1071_v33 = vsub.f32 %v315_v11, %v332_v22  ;;  %p814_p4 = scmp.ne.s32.totalorder %s812_s6, %s813_s7  ;;  %p819_p8 = scmp.lt.s32.totalorder %s817_s28, %s813_s7 }
  0x37   : > { %v341_v30 = vmul.f32 1.442695, %v333_v23  ;;  %v345_v32 = vmul.f32 1.442695, %v335_v25  ;;  %v349_v36 = vmul.f32 1.442695, %v337_v27  ;;  %v430_v53 = vadd.f32 %v424_v47, %v423_v46 }
  0x38   : > { %v343_v31 = vmul.f32 1.442695, %v334_v24  ;;  %v347_v34 = vmul.f32 1.442695, %v336_v26  ;;  %v351_v37 = vmul.f32 1.442695, %v1067_v28  ;;  %p815_p5 = pnand %p814_p4, %p991_p9  ;;  %p820_p10 = por %p819_p8, %p818_p7 }
  0x39   : > { %717 = vpow2.f32 %v341_v30  ;;  %v353_v39 = vmul.f32 1.442695, %v1069_v29  ;;  %v355_v40 = vmul.f32 1.442695, %v1071_v33  ;;  %v379_v42 = vsel %vm371_vm1, %v333_v23, 0.0  ;;  %v429_v48 = vld [vmem:[%s1054_s23] sm:$0xff] }
  0x3a   : > { %719 = vpow2.f32 %v343_v31  ;;  %v381_v43 = vsel %vm373_vm2, %v335_v25, 0.0  ;;  %v380_v51 = vsel %vm372_vm5, %v334_v24, 0.0  ;;  %v382_v52 = vsel %vm374_vm6, %v336_v26, 0.0  ;;  %p816_p6 = pneg %p815_p5 }
  0x3b   : > { %721 = vpow2.f32 %v345_v32  ;;  %vm376_vm8 = vcmp.eq.s32.totalorder %v1079_v38, 2  ;;  %v383_v56 = vsel %vm375_vm7, %v337_v27, 0.0  ;;  %v387_v57 = vsel %vm305_vm0, %v379_v42, 0.0 }
  0x3c   : > { %723 = vpow2.f32 %v347_v34  ;;  %v388_v61 = vsel %vm305_vm0, %v381_v43, 0.0  ;;  %v431_v62 = vadd.f32 %v430_v53, %v429_v48  ;;  %v394_v2 = vsel %vm305_vm0, %v380_v51, 0.0  ;;  %p821_p13 = pnand %p820_p10, %p816_p6 }
  0x3d   : > { %725 = vpow2.f32 %v349_v36  ;;  %v395_v3 = vsel %vm305_vm0, %v382_v52, 0.0  ;;  %vm377_vm9 = vcmp.eq.s32.totalorder %v1074_v35, 3  ;;  %v384_v7 = vsel %vm376_vm8, %v1067_v28, 0.0 }
  0x3e   : > { %727 = vpow2.f32 %v351_v37  ;;  %432 = vst.msk [vmem:[%s1054_s23] sm:$0xff] %vm305_vm0, %v431_v62  ;;  %vm378_vm10 = vcmp.eq.s32.totalorder %v1079_v38, 3  ;;  %v389_v11 = vadd.f32 %v388_v61, %v387_v57 }
  0x3f   : > { %v718_v41 = vpop.eup %717  ;;  %729 = vpow2.f32 %v353_v39 }
  0x40   : > { %v720_v44 = vpop.eup %719  ;;  %731 = vpow2.f32 %v355_v40  ;;  %v357_v45 = vsel %vm305_vm0, %v718_v41, 0.0 }
  0x41   : > { %v722_v49 = vpop.eup %721  ;;  %v364_v50 = vsel %vm305_vm0, %v720_v44, 0.0 }
  0x42   : > { %v724_v54 = vpop.eup %723  ;;  %v358_v55 = vsel %vm305_vm0, %v722_v49, 0.0 }
  0x43   : > { %v726_v58 = vpop.eup %725  ;;  %v359_v59 = vadd.f32 %v358_v55, %v357_v45  ;;  %v365_v60 = vsel %vm305_vm0, %v724_v54, 0.0 }
  0x44   : > { %v728_v63 = vpop.eup %727  ;;  %v360_v0 = vsel %vm305_vm0, %v726_v58, 0.0  ;;  %v366_v1 = vadd.f32 %v365_v60, %v364_v50 }
  0x45   : > { %v730_v4 = vpop.eup %729  ;;  %v361_v5 = vadd.f32 %v360_v0, %v359_v59  ;;  %v367_v6 = vsel %vm305_vm0, %v728_v63, 0.0 }
  0x46   : > { %v732_v8 = vpop.eup %731  ;;  %v362_v9 = vsel %vm305_vm0, %v730_v4, 0.0  ;;  %v368_v10 = vadd.f32 %v367_v6, %v366_v1 }
  0x47   : > { %824 = shalt.err (!%p821_p13)
}
  0x48   : > { %647 = dma.vmem_to_hbm [thread:$0]  (%p991_p9), %s1119_s22, 128, %s1121_s4, %s439_s5   ;;  %v363_v12 = vadd.f32 %v362_v9, %v361_v5  ;;  %v369_v13 = vsel %vm305_vm0, %v732_v8, 0.0  ;;  %v390_v14 = vsel %vm305_vm0, %v383_v56, 0.0  ;;  %v396_v15 = vadd.f32 %v395_v3, %v394_v2  ;;  %v425_v34 = vld [vmem:[%s1049_s21] sm:$0xff] }
  0x49   : > { %v370_v16 = vadd.f32 %v369_v13, %v368_v10  ;;  %v385_v17 = vsel %vm377_vm9, %v1069_v29, 0.0  ;;  %v397_v18 = vsel %vm305_vm0, %v384_v7, 0.0  ;;  %v386_v19 = vsel %vm378_vm10, %v1071_v33, 0.0  ;;  %s451_s24 = scalar_lea.hbm %s1209_s2, %s636_s0  ;;  %s453_s29 = sshll.u32 %s1049_s21, 4  ;;  %s454_s29 = int_to_ptr.vmem [resolvable:$true] %s453_s29 }
  0x4a   : > { %733 = vlog2.f32 %v363_v12  ;;  %v391_v20 = vadd.f32 %v390_v14, %v389_v11  ;;  %v392_v21 = vsel %vm305_vm0, %v385_v17, 0.0  ;;  %v398_v22 = vadd.f32 %v397_v18, %v396_v15  ;;  %s455_s30 = sshll.u32 %s451_s24, 4  ;;  %s434_s15 = scalar_lea.sflag [#allocation4], %s1032_s8  ;;  %s456_s30 = int_to_ptr.hbm [resolvable:$true] %s455_s30 }
  0x4b   : > { %735 = vlog2.f32 %v370_v16  ;;  %v399_v23 = vsel %vm305_vm0, %v386_v19, 0.0  ;;  %s839_s22 = sshra.s32 %s456_s30, 4  ;;  %s845_s6 = scalar_lea.hbm %s1209_s2, 16  ;;  %s840_s22 = int_to_ptr.hbm [resolvable:$true] %s839_s22 }
  0x4c   : > { %v393_v24 = vadd.f32 %v392_v21, %v391_v20  ;;  %v400_v26 = vadd.f32 %v399_v23, %v398_v22  ;;  %s841_s0 = scalar_lea.hbm %s840_s22, 8  ;;  %p846_p3 = scmp.lt.s32.totalorder %s840_s22, %s1209_s2 }
  0x4d   : > { %p842_p0 = scmp.ne.s32.totalorder %s840_s22, %s841_s0  ;;  %p847_p4 = scmp.lt.s32.totalorder %s845_s6, %s841_s0 }
  0x4f   : > { %p843_p1 = pnand %p842_p0, %p991_p9  ;;  %p848_p5 = por %p847_p4, %p846_p3 }
  0x50   : > { %v734_v25 = vpop.eup %733 }
  0x51   : > { %v736_v27 = vpop.eup %735  ;;  %v402_v28 = vmul.f32 0.6931472, %v734_v25  ;;  %p844_p2 = pneg %p843_p1 }
  0x52   : > { %v404_v29 = vmul.f32 0.6931472, %v736_v27 }
  0x53   : > { %v405_v30 = vsub.f32 %v402_v28, %v393_v24  ;;  %p849_p6 = pnand %p848_p5, %p844_p2 }
  0x54   : > { %v406_v31 = vsub.f32 %v404_v29, %v400_v26 }
  0x55   : > { %v421_v32 = vsel %vm415_vm3, %v405_v30, 0.0 }
  0x56   : > { %v422_v33 = vsel %vm416_vm4, %v406_v31, 0.0 }
  0x57   : > { %v426_v36 = vadd.f32 %v422_v33, %v421_v32 }
  0x59   : > { %v427_v37 = vadd.f32 %v426_v36, %v425_v34 }
  0x5b   : > { %428 = vst.msk [vmem:[%s1049_s21] sm:$0xff] %vm305_vm0, %v427_v37 }
  0x5c   : > { %852 = shalt.err (!%p849_p6)
}
  0x5d   : > { %646 = dma.vmem_to_hbm [thread:$0]  (%p991_p9), %s454_s29, 128, %s456_s30, %s434_s15  }
  0x5e PF: > { %s483_s8 = sand.u32 1, %s895_s12   ;;  %p658_p7 = pnand %p622_p12, %p998_p11 }
  0x5f   : > { %s484_s21 = scalar_lea.sflag [#allocation4], %s483_s8 }
  0x60   : > { %p659_p8 = pneg %p658_p7 }
  0x62   : > { %886 = dma.done.wait (%p659_p8), %s484_s21, 128  }
  0x63   : > { %888 = vsyncadd (%p659_p8), %s484_s21, 4294967168  ;;  %s494_s11 = scalar_lea.sflag [#allocation9], %s483_s8 }
  0x64   : > { %890 = dma.done.wait (%p659_p8), %s494_s11, 128  }
  0x65   : > { %892 = vsyncadd (%p659_p8), %s494_s11, 4294967168  ;;  %s26_s17 = sadd.s32 1, %s915_s17   ;;  %s1218_s12 = smov %s899_s13 }
  0x66   : > { %p23_p10 = scmp.ge.s32.totalorder %s26_s17, 4   ;;  %s1219_s13 = smov %s903_s14 }
  0x67   : > { %s1220_s14 = smov %s996_s26  ;;  %s1221_s15 = smov %s911_s16 }
  0x68   : > { %s1222_s16 = smov %s1224_s20  ;;  %25 = sbr.rel (!%p23_p10) target bundleno = 12 (0xc), region = 107 }
  0x6d   :  { %500 = vsyncpa [#allocation3], 1 }
  0x6e   :  { %502 = vsyncpa [#allocation3 + $0x1], 1 }
  0x6f   :  { %503 = vsyncpa [#allocation6], 1 }
  0x70   :  { %505 = vsyncpa [#allocation6 + $0x1], 1 }
  0x71   :  { %506 = vsyncpa [#allocation4], 1 }
  0x72   :  { %508 = vsyncpa [#allocation4 + $0x1], 1 }
  0x73   :  { %509 = vsyncpa [#allocation9], 1 }
  0x74   :  { %511 = vsyncpa [#allocation9 + $0x1], 1 }

</bundles_post_ra>
